<compile_context>
chip_gen: v6e
topology: v6e:2x2x1
jax: 0.10.0
libtpu: 0.0.40
codegen_flags: <defaults>
</compile_context>

<pallas_src>
import jax
import jax.numpy as jnp
from jax.experimental import pallas as pl
from jax.experimental.pallas import tpu as pltpu


def _round_up(x, m):
    return (x + m - 1) // m * m


def _decoder_kernel(z_ref, w1_ref, b1_ref, w2_ref, b2_ref, o_ref):
    """One batch tile: sigmoid(relu(z @ W1 + b1) @ W2 + b2).

    z_ref : [bt, z_dim]       f32   (cast to bf16 in-kernel for the MXU)
    w1_ref: [z_dim, h_pad]    bf16   b1_ref: [1, h_pad]    f32
    w2_ref: [h_pad, out_dim]  bf16   b2_ref: [1, out_dim]  f32
    o_ref : [bt, out_dim]     f32
    """
    # Layer 1: bf16 x bf16 -> f32 accumulation on the MXU, bias + ReLU in f32.
    h = jnp.dot(z_ref[...].astype(jnp.bfloat16), w1_ref[...],
                preferred_element_type=jnp.float32)
    h = jnp.maximum(h + b1_ref[...], 0.0)
    # Layer 2: cast activations to bf16 for the MXU, accumulate in f32.
    out = jnp.dot(h.astype(w2_ref.dtype), w2_ref[...],
                  preferred_element_type=jnp.float32) + b2_ref[...]
    # sigmoid(x) = 0.5 * (tanh(x/2) + 1): single EUP transcendental, frees the VPU.
    o_ref[...] = (0.5 * (jnp.tanh(out * 0.5) + 1.0)).astype(o_ref.dtype)


def _decoder_pallas(z_p, w1, b1, w2, b2, *, batch_tile):
    b_pad, z_dim = z_p.shape
    h_pad = w1.shape[1]
    out_dim = w2.shape[1]
    grid = (b_pad // batch_tile,)
    return pl.pallas_call(
        _decoder_kernel,
        out_shape=jax.ShapeDtypeStruct((b_pad, out_dim), jnp.float32),
        grid=grid,
        in_specs=[
            pl.BlockSpec((batch_tile, z_dim), lambda i: (i, 0)),   # z tile (full last dim)
            pl.BlockSpec((z_dim, h_pad), lambda i: (0, 0)),        # W1 (grid-invariant)
            pl.BlockSpec((1, h_pad), lambda i: (0, 0)),            # b1
            pl.BlockSpec((h_pad, out_dim), lambda i: (0, 0)),      # W2 (grid-invariant)
            pl.BlockSpec((1, out_dim), lambda i: (0, 0)),          # b2
        ],
        out_specs=pl.BlockSpec((batch_tile, out_dim), lambda i: (i, 0)),  # true width
        compiler_params=pltpu.CompilerParams(
            dimension_semantics=("parallel",),
            vmem_limit_bytes=48 * 1024 * 1024,
        ),
    )(z_p, w1, b1, w2, b2)


def prepare_params(params):
    """Pad the hidden dim to a multiple of 128 and cast weights to bf16 (done once).

    z_dim and out_dim stay at their true sizes (blocks use full-array last dims).
    """
    w1, b1, w2, b2 = params["w1"], params["b1"], params["w2"], params["b2"]
    z_dim, hidden = w1.shape
    out_dim = w2.shape[1]
    hp = _round_up(hidden, 128)
    w1p = jnp.zeros((z_dim, hp), jnp.bfloat16).at[:, :hidden].set(w1.astype(jnp.bfloat16))
    b1p = jnp.zeros((1, hp), jnp.float32).at[:, :hidden].set(b1.astype(jnp.float32))
    w2p = jnp.zeros((hp, out_dim), jnp.bfloat16).at[:hidden, :].set(w2.astype(jnp.bfloat16))
    b2p = b2.astype(jnp.float32).reshape(1, out_dim)
    return w1p, b1p, w2p, b2p


def _pick_tile(B, batch_tile):
    """Batch tile: multiple of 16, capped at batch_tile, >= 2 grid steps when possible."""
    b16 = _round_up(B, 16)
    bt = min(batch_tile, b16)
    if b16 >= 32:  # enough rows for two tiles -> make sure both TCs get work (v7x)
        while bt > 16 and pl.cdiv(B, bt) < 2:
            bt = max(16, _round_up((bt + 1) // 2, 16))
    b_pad = _round_up(B, bt)
    return bt, b_pad


def decoder_forward(z, w1p, b1p, w2p, b2p, *, batch_tile=512):
    """Pallas equivalent of Decoder.forward. Returns mean with shape [B, out_dim]."""
    B, _ = z.shape
    bt, b_pad = _pick_tile(B, batch_tile)

    z_p = z.astype(jnp.float32)
    if b_pad != B:  # only pad the batch dim, and only when needed
        z_p = jnp.pad(z_p, ((0, b_pad - B), (0, 0)))

    out = _decoder_pallas(z_p, w1p, b1p, w2p, b2p, batch_tile=bt)
    return out if b_pad == B else out[:B]


def init_params(key, z_dim, hidden_dim, out_dim, dtype=jnp.float32):
    """Deterministic init mimicking nn.Linear's U(-1/sqrt(fan_in), +1/sqrt(fan_in))."""
    keys = jax.random.split(key, 4)

    def lin(kw, kb, fan_in, fan_out):
        bound = 1.0 / jnp.sqrt(fan_in)
        w = jax.random.uniform(kw, (fan_in, fan_out), dtype, -bound, bound)
        b = jax.random.uniform(kb, (1, fan_out), dtype, -bound, bound)
        return w, b

    w1, b1 = lin(keys[0], keys[1], z_dim, hidden_dim)
    w2, b2 = lin(keys[2], keys[3], hidden_dim, out_dim)
    return {"w1": w1, "b1": b1, "w2": w2, "b2": b2}


def _reference_forward(z, params):
    """Plain-JAX reference (mirrors the PyTorch module, same bf16 weight cast)."""
    h = jnp.dot(z.astype(jnp.bfloat16), params["w1"].astype(jnp.bfloat16),
                preferred_element_type=jnp.float32) + params["b1"]
    h = jnp.maximum(h, 0.0)
    o = jnp.dot(h.astype(jnp.bfloat16), params["w2"].astype(jnp.bfloat16),
                preferred_element_type=jnp.float32) + params["b2"]
    return 1.0 / (1.0 + jnp.exp(-o))


if __name__ == "__main__":
    # Shapes consistent with the module defaults: z_dim=20, hidden_dim=500, out_dim=784.
    Z_DIM, HIDDEN, OUT_DIM = 20, 500, 784

    key = jax.random.PRNGKey(0)
    k_z, k_p = jax.random.split(key)
    params = init_params(k_p, Z_DIM, HIDDEN, OUT_DIM)

    # Pad + cast weights once, outside the jitted forward.
    w1p, b1p, w2p, b2p = prepare_params(params)

    fwd = jax.jit(decoder_forward, static_argnames=("batch_tile",))

    # Small batch (latency / single-step path).
    B = 16
    z = jax.random.normal(k_z, (B, Z_DIM), dtype=jnp.float32)
    mean = fwd(z, w1p, b1p, w2p, b2p)
    jax.block_until_ready(mean)
    ref = _reference_forward(z, params)
    assert mean.shape == (B, OUT_DIM)
    assert jnp.allclose(mean, ref, atol=1e-2, rtol=1e-2)
    assert bool(jnp.all((mean >= 0.0) & (mean <= 1.0)))  # sigmoid range

    # Larger batch exercising the multi-step grid (>= 2 steps -> both TCs on v7x).
    B2 = 160
    z2 = jax.random.normal(jax.random.PRNGKey(1), (B2, Z_DIM), dtype=jnp.float32)
    mean2 = fwd(z2, w1p, b1p, w2p, b2p)
    jax.block_until_ready(mean2)
    ref2 = _reference_forward(z2, params)
    assert mean2.shape == (B2, OUT_DIM)
    assert jnp.allclose(mean2, ref2, atol=1e-2, rtol=1e-2)

    print("KERNEL_OK")
</pallas_src>

<mosaic_0001>
module attributes {stable_mosaic.version = 11 : i64} {
  func.func @_decoder_kernel(%arg0: i32, %arg1: memref<16x20xf32, #tpu.memory_space<vmem>>, %arg2: memref<20x512xbf16, #tpu.memory_space<vmem>>, %arg3: memref<1x512xf32, #tpu.memory_space<vmem>>, %arg4: memref<512x784xbf16, #tpu.memory_space<vmem>>, %arg5: memref<1x784xf32, #tpu.memory_space<vmem>>, %arg6: memref<16x784xf32, #tpu.memory_space<vmem>>) attributes {dimension_semantics = [#tpu.dimension_semantics<parallel>], iteration_bounds = array<i64: 1>, scalar_prefetch = 0 : i64, scratch_operands = 0 : i64, tpu.core_type = #tpu.core_type<tc>, window_params = [{transform_indices = @transform_0, window_bounds = array<i64: 16, 20>}, {pipeline_mode = #tpu.pipeline_mode<synchronous>, transform_indices = @transform_1, window_bounds = array<i64: 20, 512>}, {pipeline_mode = #tpu.pipeline_mode<synchronous>, transform_indices = @transform_2, window_bounds = array<i64: 1, 512>}, {pipeline_mode = #tpu.pipeline_mode<synchronous>, transform_indices = @transform_3, window_bounds = array<i64: 512, 784>}, {pipeline_mode = #tpu.pipeline_mode<synchronous>, transform_indices = @transform_4, window_bounds = array<i64: 1, 784>}, {transform_indices = @transform_5, window_bounds = array<i64: 16, 784>}]} {
    %c0 = arith.constant 0 : index
    %c0_0 = arith.constant 0 : index
    %0 = vector.load %arg1[%c0, %c0_0] : memref<16x20xf32, #tpu.memory_space<vmem>>, vector<16x20xf32>
    %1 = arith.truncf %0 : vector<16x20xf32> to vector<16x20xbf16>
    %c0_1 = arith.constant 0 : index
    %c0_2 = arith.constant 0 : index
    %2 = vector.load %arg2[%c0_1, %c0_2] : memref<20x512xbf16, #tpu.memory_space<vmem>>, vector<20x512xbf16>
    %cst = arith.constant dense<0.000000e+00> : vector<16x512xf32>
    %3 = tpu.matmul %1, %2, %cst {dimension_numbers = #tpu.dot_dimension_numbers<[1], [0], [0], [1], [0, 0, 1, 1], [], []>} : vector<16x20xbf16>, vector<20x512xbf16>, vector<16x512xf32> -> vector<16x512xf32>
    %c0_3 = arith.constant 0 : index
    %c0_4 = arith.constant 0 : index
    %4 = vector.load %arg3[%c0_3, %c0_4] : memref<1x512xf32, #tpu.memory_space<vmem>>, vector<1x512xf32>
    %5 = vector.broadcast %4 : vector<1x512xf32> to vector<16x512xf32>
    %6 = arith.addf %3, %5 : vector<16x512xf32>
    %cst_5 = arith.constant 0.000000e+00 : f32
    %7 = vector.broadcast %cst_5 : f32 to vector<16x512xf32>
    %8 = arith.maximumf %6, %7 : vector<16x512xf32>
    %9 = arith.truncf %8 : vector<16x512xf32> to vector<16x512xbf16>
    %c0_6 = arith.constant 0 : index
    %c0_7 = arith.constant 0 : index
    %10 = vector.load %arg4[%c0_6, %c0_7] : memref<512x784xbf16, #tpu.memory_space<vmem>>, vector<512x784xbf16>
    %cst_8 = arith.constant dense<0.000000e+00> : vector<16x784xf32>
    %11 = tpu.matmul %9, %10, %cst_8 {dimension_numbers = #tpu.dot_dimension_numbers<[1], [0], [0], [1], [0, 0, 1, 1], [], []>} : vector<16x512xbf16>, vector<512x784xbf16>, vector<16x784xf32> -> vector<16x784xf32>
    %c0_9 = arith.constant 0 : index
    %c0_10 = arith.constant 0 : index
    %12 = vector.load %arg5[%c0_9, %c0_10] : memref<1x784xf32, #tpu.memory_space<vmem>>, vector<1x784xf32>
    %13 = vector.broadcast %12 : vector<1x784xf32> to vector<16x784xf32>
    %14 = arith.addf %11, %13 : vector<16x784xf32>
    %cst_11 = arith.constant 5.000000e-01 : f32
    %15 = vector.broadcast %cst_11 : f32 to vector<16x784xf32>
    %16 = arith.mulf %14, %15 : vector<16x784xf32>
    %17 = math.tanh %16 : vector<16x784xf32>
    %cst_12 = arith.constant 1.000000e+00 : f32
    %18 = vector.broadcast %cst_12 : f32 to vector<16x784xf32>
    %19 = arith.addf %17, %18 : vector<16x784xf32>
    %cst_13 = arith.constant 5.000000e-01 : f32
    %20 = vector.broadcast %cst_13 : f32 to vector<16x784xf32>
    %21 = arith.mulf %20, %19 : vector<16x784xf32>
    %c0_14 = arith.constant 0 : index
    %c0_15 = arith.constant 0 : index
    %22 = vector.load %arg6[%c0_14, %c0_15] : memref<16x784xf32, #tpu.memory_space<vmem>>, vector<16x784xf32>
    tpu.vector_store %arg6[%c0_14, %c0_15], %21 {strides = array<i32>} : memref<16x784xf32, #tpu.memory_space<vmem>>, vector<16x784xf32>,
    return
  }
  func.func @transform_0(%arg0: i32) -> (i32, i32) {
    %c0_i32 = arith.constant 0 : i32
    %c0_i32_0 = arith.constant 0 : i32
    return %arg0, %c0_i32 : i32, i32
  }
  func.func @transform_1(%arg0: i32) -> (i32, i32) {
    %c0_i32 = arith.constant 0 : i32
    %c0_i32_0 = arith.constant 0 : i32
    %c0_i32_1 = arith.constant 0 : i32
    return %c0_i32, %c0_i32_0 : i32, i32
  }
  func.func @transform_2(%arg0: i32) -> (i32, i32) {
    %c0_i32 = arith.constant 0 : i32
    %c0_i32_0 = arith.constant 0 : i32
    %c0_i32_1 = arith.constant 0 : i32
    return %c0_i32, %c0_i32_0 : i32, i32
  }
  func.func @transform_3(%arg0: i32) -> (i32, i32) {
    %c0_i32 = arith.constant 0 : i32
    %c0_i32_0 = arith.constant 0 : i32
    %c0_i32_1 = arith.constant 0 : i32
    return %c0_i32, %c0_i32_0 : i32, i32
  }
  func.func @transform_4(%arg0: i32) -> (i32, i32) {
    %c0_i32 = arith.constant 0 : i32
    %c0_i32_0 = arith.constant 0 : i32
    %c0_i32_1 = arith.constant 0 : i32
    return %c0_i32, %c0_i32_0 : i32, i32
  }
  func.func @transform_5(%arg0: i32) -> (i32, i32) {
    %c0_i32 = arith.constant 0 : i32
    %c0_i32_0 = arith.constant 0 : i32
    return %arg0, %c0_i32 : i32, i32
  }
}

</mosaic_0001>

<bundles_post_ra>
// kernel: decoder_forward.1
= control target key start
LH: loop header
LB: loop body
LE: loop exit
PB: predicated region body
PF: predicated region fallthrough
CT: control target
= control target key end

     0   :  { %vm87_vm0 = vcmask 1041408   ;;  %v2734_v15 = vmov 0   ;;  %vm83_vm1 = vcmask 162816   ;;  %s3531_s0 = inlined_call_operand.vmem [shape: f32[16,20], index: 0, kind: input, shape index: {}]   ;;  %s3532_s1 = inlined_call_operand.vmem [shape: bf16[20,512], index: 1, kind: input, shape index: {}]   ;;  %s3533_s2 = inlined_call_operand.vmem [shape: f32[1,512], index: 2, kind: input, shape index: {}]   ;;  %s3534_s3 = inlined_call_operand.vmem [shape: bf16[512,784], index: 3, kind: input, shape index: {}]   ;;  %s3535_s4 = inlined_call_operand.vmem [shape: f32[1,784], index: 4, kind: input, shape index: {}]   ;;  %s3536_s5 = inlined_call_operand.hbm [shape: f32[16,784], index: 5, kind: output, shape index: {}]  }
   0x1   :  { %v29_v0 = vld [vmem:[%s3532_s1 + $0x20] sm:$0x33]  ;;  %v30_v1 = vld [vmem:[%s3532_s1 + $0x28] sm:$0x33]  ;;  %132 = vmatprep.mubr.bf16.mxu0 %v2734_v15  ;;  %175 = vmatprep.mubr.bf16.mxu1 %v2734_v15  ;;  %v2372_v20 = vld [vmem:[%s3534_s3 + $0x154] ss:$28 sps:$4 sm:$0xff]  }
   0x2   :  { %v2075_v2 = vcombine.high %v29_v0, %v29_v0  ;;  %v2077_v3 = vcombine.high %v30_v1, %v30_v1  ;;  %v2074_v4 = vcombine.low %v29_v0, %v29_v0  ;;  %v2076_v5 = vcombine.low %v30_v1, %v30_v1  ;;  %v2358_v6 = vld [vmem:[%s3532_s1 + $0x4] ss:$16 sps:$4 sm:$0xff]   ;;  %v2360_v7 = vld [vmem:[%s3532_s1 + $0xc] ss:$16 sps:$4 sm:$0xff]   ;;  %v2362_v8 = vld [vmem:[%s3532_s1] ss:$16 sps:$4 sm:$0xff]  }
   0x3   :  { %v2363_v11 = vld [vmem:[%s3532_s1 + $0x8] ss:$16 sps:$4 sm:$0xff]   ;;  %v22_v12 = vld [vmem:[%s3531_s0] sm:$0xff]  ;;  %v2375_v21 = vld [vmem:[%s3534_s3 + $0x4d4] ss:$28 sps:$4 sm:$0xff]  }
   0x4   :  { %2078 = vmatprep.subr.msk.bf16.mxu0 %vm87_vm0, %v2075_v2  ;;  %2080 = vmatprep.subr.msk.bf16.mxu1 %vm87_vm0, %v2077_v3  ;;  %v89_v9 = vsel %vm87_vm0, %v2074_v4, 0  ;;  %v95_v10 = vsel %vm87_vm0, %v2076_v5, 0  ;;  %v23_v13 = vld [vmem:[%s3531_s0 + $0x8] sm:$0xff]  ;;  %v2378_v24 = vld [vmem:[%s3534_s3 + $0x11c] ss:$28 sps:$4 sm:$0xff]  }
   0x5   :  { %113 = vmatpush1.bf16.msra.mxu0 %v89_v9  ;;  %156 = vmatpush1.bf16.msra.mxu1 %v95_v10  ;;  %v2366_v14 = vld [vmem:[%s3534_s3 + $0x18c] ss:$28 sps:$4 sm:$0xff]   ;;  %v24_v17 = vpack.c.bf16 %v23_v13, %v22_v12  ;;  %v2381_v25 = vld [vmem:[%s3534_s3 + $0x49c] ss:$28 sps:$4 sm:$0xff]   ;;  %v2384_v28 = vld [vmem:[%s3534_s3 + $0xe4] ss:$28 sps:$4 sm:$0xff]  }
   0x6   :  { %114 = vmatprep.subr.bf16.mxu0 %v2358_v6  ;;  %157 = vmatprep.subr.bf16.mxu1 %v2360_v7  ;;  %v2369_v16 = vld [vmem:[%s3534_s3 + $0x50c] ss:$28 sps:$4 sm:$0xff]   ;;  %v2376_v26 = vld [vmem:[%s3534_s3 + $0x118] ss:$28 sps:$4 sm:$0xff]   ;;  %v2387_v29 = vld [vmem:[%s3534_s3 + $0x464] ss:$28 sps:$4 sm:$0xff]  }
   0x7   :  { %v2364_v18 = vld [vmem:[%s3534_s3 + $0x188] ss:$28 sps:$4 sm:$0xff]   ;;  %v2370_v22 = vld [vmem:[%s3534_s3 + $0x150] ss:$28 sps:$4 sm:$0xff]   ;;  %v2379_v27 = vld [vmem:[%s3534_s3 + $0x498] ss:$28 sps:$4 sm:$0xff]  }
   0x8   :  { %v2367_v19 = vld [vmem:[%s3534_s3 + $0x508] ss:$28 sps:$4 sm:$0xff]   ;;  %v2373_v23 = vld [vmem:[%s3534_s3 + $0x4d0] ss:$28 sps:$4 sm:$0xff]   ;;  %v2382_v30 = vld [vmem:[%s3534_s3 + $0xe0] ss:$28 sps:$4 sm:$0xff]  }
   0x9   :  { %115 = vmatpush1.bf16.msra.mxu0 %v2362_v8  ;;  %158 = vmatpush1.bf16.msra.mxu1 %v2363_v11  ;;  %v2385_v31 = vld [vmem:[%s3534_s3 + $0x460] ss:$28 sps:$4 sm:$0xff]   ;;  %v2390_v32 = vld [vmem:[%s3534_s3 + $0xac] ss:$28 sps:$4 sm:$0xff]   ;;  %v2396_v36 = vld [vmem:[%s3534_s3 + $0x74] ss:$28 sps:$4 sm:$0xff]  }
   0xa   :  { %1643 = vmatprep.subr.bf16.mxu0 %v2366_v14  ;;  %1686 = vmatprep.subr.bf16.mxu1 %v2369_v16  ;;  %v2393_v33 = vld [vmem:[%s3534_s3 + $0x42c] ss:$28 sps:$4 sm:$0xff]   ;;  %v2399_v37 = vld [vmem:[%s3534_s3 + $0x3f4] ss:$28 sps:$4 sm:$0xff]   ;;  %v2402_v40 = vld [vmem:[%s3534_s3 + $0x3c] ss:$28 sps:$4 sm:$0xff]  }
   0xb   :  { %v2388_v34 = vld [vmem:[%s3534_s3 + $0xa8] ss:$28 sps:$4 sm:$0xff]   ;;  %v2394_v38 = vld [vmem:[%s3534_s3 + $0x70] ss:$28 sps:$4 sm:$0xff]   ;;  %v2405_v41 = vld [vmem:[%s3534_s3 + $0x3bc] ss:$28 sps:$4 sm:$0xff]  }
   0xc   :  { %2079 = vmatmul.mubr.msk.bf16.vlgmr.msra.gmra.mxu0 %vm83_vm1, %v24_v17  ;;  %2081 = vmatmul.mubr.msk.bf16.vlgmr.msra.gmra.mxu1 %vm83_vm1, %v24_v17  ;;  %v2391_v35 = vld [vmem:[%s3534_s3 + $0x428] ss:$28 sps:$4 sm:$0xff]   ;;  %v2397_v39 = vld [vmem:[%s3534_s3 + $0x3f0] ss:$28 sps:$4 sm:$0xff]   ;;  %v2400_v42 = vld [vmem:[%s3534_s3 + $0x38] ss:$28 sps:$4 sm:$0xff]  }
   0xd   :  { %1644 = vmatpush1.bf16.msra.mxu0 %v2364_v18  ;;  %1687 = vmatpush1.bf16.msra.mxu1 %v2367_v19  ;;  %v2403_v43 = vld [vmem:[%s3534_s3 + $0x3b8] ss:$28 sps:$4 sm:$0xff]   ;;  %v2408_v44 = vld [vmem:[%s3534_s3 + $0x4] ss:$28 sps:$4 sm:$0xff]   ;;  %v2414_v48 = vld [vmem:[%s3534_s3 + $0x34c] ss:$28 sps:$4 sm:$0xff]  }
   0xe   :  { %1645 = vmatprep.subr.bf16.mxu0 %v2372_v20  ;;  %1688 = vmatprep.subr.bf16.mxu1 %v2375_v21  ;;  %v2411_v45 = vld [vmem:[%s3534_s3 + $0x384] ss:$28 sps:$4 sm:$0xff]   ;;  %v2417_v49 = vld [vmem:[%s3534_s3 + $0x6cc] ss:$28 sps:$4 sm:$0xff]   ;;  %v2420_v52 = vld [vmem:[%s3534_s3 + $0x314] ss:$28 sps:$4 sm:$0xff]  }
   0xf   :  { %v2406_v46 = vld [vmem:[%s3534_s3] ss:$28 sps:$4 sm:$0xff]   ;;  %v2412_v50 = vld [vmem:[%s3534_s3 + $0x348] ss:$28 sps:$4 sm:$0xff]   ;;  %v2423_v53 = vld [vmem:[%s3534_s3 + $0x694] ss:$28 sps:$4 sm:$0xff]  }
  0x10   :  { %v2409_v47 = vld [vmem:[%s3534_s3 + $0x380] ss:$28 sps:$4 sm:$0xff]   ;;  %v2415_v51 = vld [vmem:[%s3534_s3 + $0x6c8] ss:$28 sps:$4 sm:$0xff]   ;;  %v2418_v54 = vld [vmem:[%s3534_s3 + $0x310] ss:$28 sps:$4 sm:$0xff]  }
  0x11   :  { %1646 = vmatpush1.bf16.msra.mxu0 %v2370_v22  ;;  %1689 = vmatpush1.bf16.msra.mxu1 %v2373_v23  ;;  %v2421_v55 = vld [vmem:[%s3534_s3 + $0x690] ss:$28 sps:$4 sm:$0xff]   ;;  %v2426_v56 = vld [vmem:[%s3534_s3 + $0x2dc] ss:$28 sps:$4 sm:$0xff]   ;;  %v2432_v60 = vld [vmem:[%s3534_s3 + $0x2a4] ss:$28 sps:$4 sm:$0xff]  }
  0x12   :  { %1647 = vmatprep.subr.bf16.mxu0 %v2378_v24  ;;  %1690 = vmatprep.subr.bf16.mxu1 %v2381_v25  ;;  %v2429_v57 = vld [vmem:[%s3534_s3 + $0x65c] ss:$28 sps:$4 sm:$0xff]   ;;  %v2435_v61 = vld [vmem:[%s3534_s3 + $0x624] ss:$28 sps:$4 sm:$0xff]   ;;  %v2438_v0 = vld [vmem:[%s3534_s3 + $0x26c] ss:$28 sps:$4 sm:$0xff]  }
  0x13   :  { %v2424_v58 = vld [vmem:[%s3534_s3 + $0x2d8] ss:$28 sps:$4 sm:$0xff]   ;;  %v2430_v62 = vld [vmem:[%s3534_s3 + $0x2a0] ss:$28 sps:$4 sm:$0xff]   ;;  %v2441_v1 = vld [vmem:[%s3534_s3 + $0x5ec] ss:$28 sps:$4 sm:$0xff]  }
  0x14   :  { %v2427_v59 = vld [vmem:[%s3534_s3 + $0x658] ss:$28 sps:$4 sm:$0xff]   ;;  %v2433_v63 = vld [vmem:[%s3534_s3 + $0x620] ss:$28 sps:$4 sm:$0xff]   ;;  %v2436_v2 = vld [vmem:[%s3534_s3 + $0x268] ss:$28 sps:$4 sm:$0xff]  }
  0x15   :  { %1648 = vmatpush1.bf16.msra.mxu0 %v2376_v26  ;;  %1691 = vmatpush1.bf16.msra.mxu1 %v2379_v27  ;;  %v2439_v3 = vld [vmem:[%s3534_s3 + $0x5e8] ss:$28 sps:$4 sm:$0xff]   ;;  %v2444_v4 = vld [vmem:[%s3534_s3 + $0x234] ss:$28 sps:$4 sm:$0xff]   ;;  %v2450_v8 = vld [vmem:[%s3534_s3 + $0x1fc] ss:$28 sps:$4 sm:$0xff]  }
  0x16   :  { %1649 = vmatprep.subr.bf16.mxu0 %v2384_v28  ;;  %1692 = vmatprep.subr.bf16.mxu1 %v2387_v29  ;;  %v2447_v5 = vld [vmem:[%s3534_s3 + $0x5b4] ss:$28 sps:$4 sm:$0xff]   ;;  %v2453_v9 = vld [vmem:[%s3534_s3 + $0x57c] ss:$28 sps:$4 sm:$0xff]   ;;  %v2456_v12 = vld [vmem:[%s3534_s3 + $0x1c4] ss:$28 sps:$4 sm:$0xff]  }
  0x17   :  { %v2442_v6 = vld [vmem:[%s3534_s3 + $0x230] ss:$28 sps:$4 sm:$0xff]   ;;  %v2448_v10 = vld [vmem:[%s3534_s3 + $0x1f8] ss:$28 sps:$4 sm:$0xff]   ;;  %v2459_v13 = vld [vmem:[%s3534_s3 + $0x544] ss:$28 sps:$4 sm:$0xff]  }
  0x18   :  { %v2445_v7 = vld [vmem:[%s3534_s3 + $0x5b0] ss:$28 sps:$4 sm:$0xff]   ;;  %v2451_v11 = vld [vmem:[%s3534_s3 + $0x578] ss:$28 sps:$4 sm:$0xff]   ;;  %v2454_v14 = vld [vmem:[%s3534_s3 + $0x1c0] ss:$28 sps:$4 sm:$0xff]  }
  0x19   :  { %1650 = vmatpush1.bf16.msra.mxu0 %v2382_v30  ;;  %1693 = vmatpush1.bf16.msra.mxu1 %v2385_v31  ;;  %v2457_v15 = vld [vmem:[%s3534_s3 + $0x540] ss:$28 sps:$4 sm:$0xff]   ;;  %v2462_v16 = vld [vmem:[%s3534_s3 + $0x194] ss:$28 sps:$4 sm:$0xff]  }
  0x1a   :  { %1651 = vmatprep.subr.bf16.mxu0 %v2390_v32  ;;  %1694 = vmatprep.subr.bf16.mxu1 %v2393_v33  ;;  %v2465_v17 = vld [vmem:[%s3534_s3 + $0x514] ss:$28 sps:$4 sm:$0xff]  }
  0x1d   :  { %1652 = vmatpush1.bf16.msra.mxu0 %v2388_v34  ;;  %1695 = vmatpush1.bf16.msra.mxu1 %v2391_v35 }
  0x1e   :  { %1653 = vmatprep.subr.bf16.mxu0 %v2396_v36  ;;  %1696 = vmatprep.subr.bf16.mxu1 %v2399_v37 }
  0x21   :  { %1654 = vmatpush1.bf16.msra.mxu0 %v2394_v38  ;;  %1697 = vmatpush1.bf16.msra.mxu1 %v2397_v39 }
  0x22   :  { %1655 = vmatprep.subr.bf16.mxu0 %v2402_v40  ;;  %1698 = vmatprep.subr.bf16.mxu1 %v2405_v41 }
  0x25   :  { %1656 = vmatpush1.bf16.msra.mxu0 %v2400_v42  ;;  %1699 = vmatpush1.bf16.msra.mxu1 %v2403_v43 }
  0x26   :  { %1657 = vmatprep.subr.bf16.mxu0 %v2408_v44  ;;  %1700 = vmatprep.subr.bf16.mxu1 %v2411_v45 }
  0x29   :  { %1658 = vmatpush1.bf16.msra.mxu0 %v2406_v46  ;;  %1701 = vmatpush1.bf16.msra.mxu1 %v2409_v47 }
  0x2a   :  { %1659 = vmatprep.subr.bf16.mxu0 %v2414_v48  ;;  %1702 = vmatprep.subr.bf16.mxu1 %v2417_v49 }
  0x2d   :  { %1660 = vmatpush2.bf16.msra.mxu0 %v2412_v50  ;;  %1703 = vmatpush2.bf16.msra.mxu1 %v2415_v51 }
  0x2e   :  { %1661 = vmatprep.subr.bf16.mxu0 %v2420_v52  ;;  %1704 = vmatprep.subr.bf16.mxu1 %v2423_v53 }
  0x31   :  { %1662 = vmatpush2.bf16.msra.mxu0 %v2418_v54  ;;  %1705 = vmatpush2.bf16.msra.mxu1 %v2421_v55 }
  0x32   :  { %1663 = vmatprep.subr.bf16.mxu0 %v2426_v56  ;;  %1706 = vmatprep.subr.bf16.mxu1 %v2429_v57 }
  0x35   :  { %1664 = vmatpush2.bf16.msra.mxu0 %v2424_v58  ;;  %1707 = vmatpush2.bf16.msra.mxu1 %v2427_v59 }
  0x36   :  { %1665 = vmatprep.subr.bf16.mxu0 %v2432_v60  ;;  %1708 = vmatprep.subr.bf16.mxu1 %v2435_v61 }
  0x39   :  { %1666 = vmatpush2.bf16.msra.mxu0 %v2430_v62  ;;  %1709 = vmatpush2.bf16.msra.mxu1 %v2433_v63 }
  0x3a   :  { %1667 = vmatprep.subr.bf16.mxu0 %v2438_v0  ;;  %1710 = vmatprep.subr.bf16.mxu1 %v2441_v1 }
  0x3d   :  { %1668 = vmatpush2.bf16.msra.mxu0 %v2436_v2  ;;  %1711 = vmatpush2.bf16.msra.mxu1 %v2439_v3 }
  0x3e   :  { %1669 = vmatprep.subr.bf16.mxu0 %v2444_v4  ;;  %1712 = vmatprep.subr.bf16.mxu1 %v2447_v5 }
  0x41   :  { %1670 = vmatpush2.bf16.msra.mxu0 %v2442_v6  ;;  %1713 = vmatpush2.bf16.msra.mxu1 %v2445_v7 }
  0x42   :  { %1671 = vmatprep.subr.bf16.mxu0 %v2450_v8  ;;  %1714 = vmatprep.subr.bf16.mxu1 %v2453_v9 }
  0x45   :  { %1672 = vmatpush2.bf16.msra.mxu0 %v2448_v10  ;;  %1715 = vmatpush2.bf16.msra.mxu1 %v2451_v11 }
  0x46   :  { %1673 = vmatprep.subr.bf16.mxu0 %v2456_v12  ;;  %1716 = vmatprep.subr.bf16.mxu1 %v2459_v13 }
  0x49   :  { %1674 = vmatpush2.bf16.msra.mxu0 %v2454_v14  ;;  %1717 = vmatpush2.bf16.msra.mxu1 %v2457_v15 }
  0x4a   :  { %1729 = vmatprep.subr.bf16.mxu0 %v2462_v16  ;;  %1772 = vmatprep.subr.bf16.mxu1 %v2465_v17 }
  0x4b   :  { %10 = vsyncpa [#allocation3], 0  ;;  %v33_v18 = vlaneseq  ;;  %v31_v24 = vld [vmem:[%s3533_s2] sm:$0xf]  ;;  %v2460_v55 = vld [vmem:[%s3534_s3 + $0x190] ss:$28 sps:$4 sm:$0xff]  }
  0x4c   :  { %v2463_v56 = vld [vmem:[%s3534_s3 + $0x510] ss:$28 sps:$4 sm:$0xff]   ;;  %v2468_v59 = vld [vmem:[%s3534_s3 + $0x15c] ss:$28 sps:$4 sm:$0xff]   ;;  %v2474_v63 = vld [vmem:[%s3534_s3 + $0x124] ss:$28 sps:$4 sm:$0xff]  }
  0x4d   :  { %v2990_v19 = vshrl.u32 %v33_v18, 7  ;;  %v2471_v60 = vld [vmem:[%s3534_s3 + $0x4dc] ss:$28 sps:$4 sm:$0xff]   ;;  %v2477_v0 = vld [vmem:[%s3534_s3 + $0x4a4] ss:$28 sps:$4 sm:$0xff]   ;;  %vm2045_vm2 = vcmask 130048  }
  0x4e   :  { %v2466_v61 = vld [vmem:[%s3534_s3 + $0x158] ss:$28 sps:$4 sm:$0xff]   ;;  %v2472_v1 = vld [vmem:[%s3534_s3 + $0x120] ss:$28 sps:$4 sm:$0xff]   ;;  %v2480_v3 = vld [vmem:[%s3534_s3 + $0xec] ss:$28 sps:$4 sm:$0xff]  }
  0x4f   :  { %v39_v20 = vsub.s32 1, %v2990_v19  ;;  %v47_v21 = vsub.s32 3, %v2990_v19  ;;  %v35_v22 = vsub.s32 0, %v2990_v19  ;;  %v43_v23 = vsub.s32 2, %v2990_v19  ;;  %v2469_v62 = vld [vmem:[%s3534_s3 + $0x4d8] ss:$28 sps:$4 sm:$0xff]  }
  0x50   :  { %v2475_v2 = vld [vmem:[%s3534_s3 + $0x4a0] ss:$28 sps:$4 sm:$0xff]   ;;  %v2483_v4 = vld [vmem:[%s3534_s3 + $0x46c] ss:$28 sps:$4 sm:$0xff]   ;;  %v2486_v7 = vld [vmem:[%s3534_s3 + $0xb4] ss:$28 sps:$4 sm:$0xff]  }
  0x51   :  { %v40_v27 = vrot.slane %v31_v24, %v39_v20  ;;  %v48_v28 = vrot.slane %v31_v24, %v47_v21  ;;  %v36_v29 = vrot.slane %v31_v24, %v35_v22  ;;  %v44_v30 = vrot.slane %v31_v24, %v43_v23  ;;  %v2478_v5 = vld [vmem:[%s3534_s3 + $0xe8] ss:$28 sps:$4 sm:$0xff]   ;;  %v2489_v8 = vld [vmem:[%s3534_s3 + $0x434] ss:$28 sps:$4 sm:$0xff]   ;;  %v2492_v11 = vld [vmem:[%s3534_s3 + $0x7c] ss:$28 sps:$4 sm:$0xff]  }
  0x52   :  { %v2481_v6 = vld [vmem:[%s3534_s3 + $0x468] ss:$28 sps:$4 sm:$0xff]   ;;  %v2484_v9 = vld [vmem:[%s3534_s3 + $0xb0] ss:$28 sps:$4 sm:$0xff]   ;;  %v2495_v12 = vld [vmem:[%s3534_s3 + $0x3fc] ss:$28 sps:$4 sm:$0xff]  }
  0x53   :  { %v2487_v10 = vld [vmem:[%s3534_s3 + $0x430] ss:$28 sps:$4 sm:$0xff]   ;;  %v2490_v13 = vld [vmem:[%s3534_s3 + $0x78] ss:$28 sps:$4 sm:$0xff]   ;;  %v2498_v15 = vld [vmem:[%s3534_s3 + $0x44] ss:$28 sps:$4 sm:$0xff]  }
  0x54   :  { %v2493_v14 = vld [vmem:[%s3534_s3 + $0x3f8] ss:$28 sps:$4 sm:$0xff]   ;;  %v2501_v16 = vld [vmem:[%s3534_s3 + $0x3c4] ss:$28 sps:$4 sm:$0xff]   ;;  %v2504_v24 = vld [vmem:[%s3534_s3 + $0xc] ss:$28 sps:$4 sm:$0xff]  }
  0x55   :  { %v2496_v17 = vld [vmem:[%s3534_s3 + $0x40] ss:$28 sps:$4 sm:$0xff]  }
  0x56   :  { %v2499_v18 = vld [vmem:[%s3534_s3 + $0x3c0] ss:$28 sps:$4 sm:$0xff]  }
  0xcc   :  { %v134_v25 = vpop.f32.mrf.mxu0  ;;  %v177_v26 = vpop.f32.mrf.mxu1 }
  0xcd   :  { %v135_v39 = vadd.f32 %v134_v25, %v36_v29  ;;  %v178_v40 = vadd.f32 %v177_v26, %v44_v30  ;;  %v2507_v25 = vld [vmem:[%s3534_s3 + $0x38c] ss:$28 sps:$4 sm:$0xff]  }
  0xce   :  { %v136_v31 = vpop.f32.mrf.mxu0  ;;  %v179_v32 = vpop.f32.mrf.mxu1  ;;  %v2502_v26 = vld [vmem:[%s3534_s3 + $0x8] ss:$28 sps:$4 sm:$0xff]  }
  0xcf   :  { %v137_v35 = vadd.f32 %v136_v31, %v40_v27  ;;  %v180_v36 = vadd.f32 %v179_v32, %v48_v28  ;;  %v186_v51 = vmax.f32 %v135_v39, 0.0  ;;  %v188_v52 = vmax.f32 %v178_v40, 0.0  ;;  %v2511_v31 = vld [vmem:[%s3534_s3 + $0x6d0] ss:$28 sps:$4 sm:$0xff]   ;;  %v2516_v32 = vld [vmem:[%s3534_s3 + $0x31c] ss:$28 sps:$4 sm:$0xff]  }
  0xd0   :  { %v138_v33 = vpop.f32.mrf.mxu0  ;;  %v181_v34 = vpop.f32.mrf.mxu1  ;;  %v2523_v39 = vld [vmem:[%s3534_s3 + $0x660] ss:$28 sps:$4 sm:$0xff]   ;;  %v2528_v40 = vld [vmem:[%s3534_s3 + $0x2ac] ss:$28 sps:$4 sm:$0xff]  }
  0xd1   :  { %v139_v37 = vadd.f32 %v138_v33, %v36_v29  ;;  %v182_v38 = vadd.f32 %v181_v34, %v44_v30  ;;  %v187_v47 = vmax.f32 %v137_v35, 0.0  ;;  %v189_v48 = vmax.f32 %v180_v36, 0.0  ;;  %v2513_v29 = vld [vmem:[%s3534_s3 + $0x6d4] ss:$28 sps:$4 sm:$0xff]   ;;  %v2519_v33 = vld [vmem:[%s3534_s3 + $0x69c] ss:$28 sps:$4 sm:$0xff]  }
  0xd2   :  { %v140_v41 = vpop.f32.mrf.mxu0  ;;  %v183_v42 = vpop.f32.mrf.mxu1  ;;  %v2508_v30 = vld [vmem:[%s3534_s3 + $0x350] ss:$28 sps:$4 sm:$0xff]   ;;  %v2514_v34 = vld [vmem:[%s3534_s3 + $0x318] ss:$28 sps:$4 sm:$0xff]   ;;  %v2522_v36 = vld [vmem:[%s3534_s3 + $0x2e4] ss:$28 sps:$4 sm:$0xff]  }
  0xd3   :  { %v141_v43 = vadd.f32 %v140_v41, %v40_v27  ;;  %v184_v44 = vadd.f32 %v183_v42, %v48_v28  ;;  %v190_v45 = vmax.f32 %v139_v37, 0.0  ;;  %v192_v46 = vmax.f32 %v182_v38, 0.0  ;;  %v2505_v27 = vld [vmem:[%s3534_s3 + $0x388] ss:$28 sps:$4 sm:$0xff]   ;;  %v2510_v28 = vld [vmem:[%s3534_s3 + $0x354] ss:$28 sps:$4 sm:$0xff]  }
  0xd4   :  { %v2517_v35 = vld [vmem:[%s3534_s3 + $0x698] ss:$28 sps:$4 sm:$0xff]   ;;  %v2525_v37 = vld [vmem:[%s3534_s3 + $0x664] ss:$28 sps:$4 sm:$0xff]   ;;  %v2531_v41 = vld [vmem:[%s3534_s3 + $0x62c] ss:$28 sps:$4 sm:$0xff]  }
  0xd5   :  { %v191_v49 = vmax.f32 %v141_v43, 0.0  ;;  %v193_v50 = vmax.f32 %v184_v44, 0.0  ;;  %v3017_v57 = vpack.c.bf16 %v190_v45, %v186_v51  ;;  %v3019_v58 = vpack.c.bf16 %v192_v46, %v188_v52  ;;  %v2520_v38 = vld [vmem:[%s3534_s3 + $0x2e0] ss:$28 sps:$4 sm:$0xff]   ;;  %v2526_v42 = vld [vmem:[%s3534_s3 + $0x2a8] ss:$28 sps:$4 sm:$0xff]  }
  0xd6   :  { %v2529_v43 = vld [vmem:[%s3534_s3 + $0x628] ss:$28 sps:$4 sm:$0xff]   ;;  %v2534_v44 = vld [vmem:[%s3534_s3 + $0x274] ss:$28 sps:$4 sm:$0xff]  }
  0xd7   :  { %v3007_v53 = vpack.c.bf16 %v191_v49, %v187_v47  ;;  %v3009_v54 = vpack.c.bf16 %v193_v50, %v189_v48  ;;  %v2537_v45 = vld [vmem:[%s3534_s3 + $0x5f4] ss:$28 sps:$4 sm:$0xff]   ;;  %v2540_v48 = vld [vmem:[%s3534_s3 + $0x23c] ss:$28 sps:$4 sm:$0xff]   ;;  %v2546_v52 = vld [vmem:[%s3534_s3 + $0x204] ss:$28 sps:$4 sm:$0xff]  }
  0xd8   :  { %v2532_v46 = vld [vmem:[%s3534_s3 + $0x270] ss:$28 sps:$4 sm:$0xff]   ;;  %v2543_v49 = vld [vmem:[%s3534_s3 + $0x5bc] ss:$28 sps:$4 sm:$0xff]  }
  0xd9   :  { %1675 = vmatprep.mubr.bf16.mxu0 %v3007_v53  ;;  %1718 = vmatprep.mubr.bf16.mxu1 %v3009_v54  ;;  %v2535_v47 = vld [vmem:[%s3534_s3 + $0x5f0] ss:$28 sps:$4 sm:$0xff]   ;;  %v2538_v50 = vld [vmem:[%s3534_s3 + $0x238] ss:$28 sps:$4 sm:$0xff]  }
  0xda   :  { %1676 = vmatmul.mubr.bf16.vlgmr.msra.gmra.mxu0 %v3017_v57  ;;  %1719 = vmatmul.mubr.bf16.vlgmr.msra.gmra.mxu1 %v3019_v58  ;;  %v2541_v51 = vld [vmem:[%s3534_s3 + $0x5b8] ss:$28 sps:$4 sm:$0xff]  }
  0xdb   :  { %1730 = vmatpush1.bf16.msra.mxu0 %v2460_v55  ;;  %1773 = vmatpush1.bf16.msra.mxu1 %v2463_v56  ;;  %v2549_v55 = vld [vmem:[%s3534_s3 + $0x584] ss:$28 sps:$4 sm:$0xff]  }
  0xdc   :  { %1761 = vmatprep.mubr.bf16.mxu0 %v3007_v53  ;;  %1804 = vmatprep.mubr.bf16.mxu1 %v3009_v54  ;;  %v2544_v56 = vld [vmem:[%s3534_s3 + $0x200] ss:$28 sps:$4 sm:$0xff]  }
  0xdd   :  { %1731 = vmatprep.subr.bf16.mxu0 %v2468_v59  ;;  %1774 = vmatprep.subr.bf16.mxu1 %v2471_v60  ;;  %v2547_v59 = vld [vmem:[%s3534_s3 + $0x580] ss:$28 sps:$4 sm:$0xff]   ;;  %v2552_v60 = vld [vmem:[%s3534_s3 + $0x1cc] ss:$28 sps:$4 sm:$0xff]  }
  0xdf   :  { %1732 = vmatpush1.bf16.msra.mxu0 %v2466_v61  ;;  %1775 = vmatpush1.bf16.msra.mxu1 %v2469_v62  ;;  %v2555_v61 = vld [vmem:[%s3534_s3 + $0x54c] ss:$28 sps:$4 sm:$0xff]  }
  0xe0   :  { %1733 = vmatprep.subr.bf16.mxu0 %v2474_v63  ;;  %1776 = vmatprep.subr.bf16.mxu1 %v2477_v0  ;;  %v2550_v62 = vld [vmem:[%s3534_s3 + $0x1c8] ss:$28 sps:$4 sm:$0xff]   ;;  %v2558_v0 = vld [vmem:[%s3534_s3 + $0x19c] ss:$28 sps:$4 sm:$0xff]  }
  0xe1   :  { %v2553_v63 = vld [vmem:[%s3534_s3 + $0x548] ss:$28 sps:$4 sm:$0xff]  }
  0xe3   :  { %1734 = vmatpush1.bf16.msra.mxu0 %v2472_v1  ;;  %1777 = vmatpush1.bf16.msra.mxu1 %v2475_v2  ;;  %v2561_v1 = vld [vmem:[%s3534_s3 + $0x51c] ss:$28 sps:$4 sm:$0xff]  }
  0xe4   :  { %1735 = vmatprep.subr.bf16.mxu0 %v2480_v3  ;;  %1778 = vmatprep.subr.bf16.mxu1 %v2483_v4  ;;  %v2556_v2 = vld [vmem:[%s3534_s3 + $0x198] ss:$28 sps:$4 sm:$0xff]   ;;  %v2564_v4 = vld [vmem:[%s3534_s3 + $0x164] ss:$28 sps:$4 sm:$0xff]  }
  0xe5   :  { %v2559_v3 = vld [vmem:[%s3534_s3 + $0x518] ss:$28 sps:$4 sm:$0xff]  }
  0xe7   :  { %1736 = vmatpush1.bf16.msra.mxu0 %v2478_v5  ;;  %1779 = vmatpush1.bf16.msra.mxu1 %v2481_v6  ;;  %v2567_v5 = vld [vmem:[%s3534_s3 + $0x4e4] ss:$28 sps:$4 sm:$0xff]  }
  0xe8   :  { %1737 = vmatprep.subr.bf16.mxu0 %v2486_v7  ;;  %1780 = vmatprep.subr.bf16.mxu1 %v2489_v8  ;;  %v2562_v6 = vld [vmem:[%s3534_s3 + $0x160] ss:$28 sps:$4 sm:$0xff]   ;;  %v2570_v8 = vld [vmem:[%s3534_s3 + $0x12c] ss:$28 sps:$4 sm:$0xff]  }
  0xe9   :  { %v2565_v7 = vld [vmem:[%s3534_s3 + $0x4e0] ss:$28 sps:$4 sm:$0xff]  }
  0xeb   :  { %1738 = vmatpush1.bf16.msra.mxu0 %v2484_v9  ;;  %1781 = vmatpush1.bf16.msra.mxu1 %v2487_v10  ;;  %v2573_v9 = vld [vmem:[%s3534_s3 + $0x4ac] ss:$28 sps:$4 sm:$0xff]  }
  0xec   :  { %1739 = vmatprep.subr.bf16.mxu0 %v2492_v11  ;;  %1782 = vmatprep.subr.bf16.mxu1 %v2495_v12  ;;  %v2568_v10 = vld [vmem:[%s3534_s3 + $0x128] ss:$28 sps:$4 sm:$0xff]   ;;  %v2576_v12 = vld [vmem:[%s3534_s3 + $0xf4] ss:$28 sps:$4 sm:$0xff]  }
  0xed   :  { %v2571_v11 = vld [vmem:[%s3534_s3 + $0x4a8] ss:$28 sps:$4 sm:$0xff]  }
  0xef   :  { %1740 = vmatpush1.bf16.msra.mxu0 %v2490_v13  ;;  %1783 = vmatpush1.bf16.msra.mxu1 %v2493_v14  ;;  %v2579_v13 = vld [vmem:[%s3534_s3 + $0x474] ss:$28 sps:$4 sm:$0xff]  }
  0xf0   :  { %1741 = vmatprep.subr.bf16.mxu0 %v2498_v15  ;;  %1784 = vmatprep.subr.bf16.mxu1 %v2501_v16  ;;  %v2574_v14 = vld [vmem:[%s3534_s3 + $0xf0] ss:$28 sps:$4 sm:$0xff]   ;;  %v2582_v16 = vld [vmem:[%s3534_s3 + $0xbc] ss:$28 sps:$4 sm:$0xff]  }
  0xf1   :  { %v2577_v15 = vld [vmem:[%s3534_s3 + $0x470] ss:$28 sps:$4 sm:$0xff]  }
  0xf3   :  { %1742 = vmatpush1.bf16.msra.mxu0 %v2496_v17  ;;  %1785 = vmatpush1.bf16.msra.mxu1 %v2499_v18  ;;  %v2585_v17 = vld [vmem:[%s3534_s3 + $0x43c] ss:$28 sps:$4 sm:$0xff]  }
  0xf4   :  { %1743 = vmatprep.subr.bf16.mxu0 %v2504_v24  ;;  %1786 = vmatprep.subr.bf16.mxu1 %v2507_v25  ;;  %v2580_v18 = vld [vmem:[%s3534_s3 + $0xb8] ss:$28 sps:$4 sm:$0xff]   ;;  %v2588_v25 = vld [vmem:[%s3534_s3 + $0x84] ss:$28 sps:$4 sm:$0xff]  }
  0xf5   :  { %v2583_v24 = vld [vmem:[%s3534_s3 + $0x438] ss:$28 sps:$4 sm:$0xff]  }
  0xf7   :  { %1744 = vmatpush1.bf16.msra.mxu0 %v2502_v26  ;;  %1787 = vmatpush1.bf16.msra.mxu1 %v2505_v27  ;;  %v2591_v26 = vld [vmem:[%s3534_s3 + $0x404] ss:$28 sps:$4 sm:$0xff]  }
  0xf8   :  { %1745 = vmatprep.subr.bf16.mxu0 %v2510_v28  ;;  %1788 = vmatprep.subr.bf16.mxu1 %v2513_v29  ;;  %v2586_v27 = vld [vmem:[%s3534_s3 + $0x80] ss:$28 sps:$4 sm:$0xff]   ;;  %v2594_v29 = vld [vmem:[%s3534_s3 + $0x4c] ss:$28 sps:$4 sm:$0xff]  }
  0xf9   :  { %v2589_v28 = vld [vmem:[%s3534_s3 + $0x400] ss:$28 sps:$4 sm:$0xff]  }
  0xfb   :  { %1746 = vmatpush2.bf16.msra.mxu0 %v2508_v30  ;;  %1789 = vmatpush2.bf16.msra.mxu1 %v2511_v31  ;;  %v2597_v30 = vld [vmem:[%s3534_s3 + $0x3cc] ss:$28 sps:$4 sm:$0xff]  }
  0xfc   :  { %1747 = vmatprep.subr.bf16.mxu0 %v2516_v32  ;;  %1790 = vmatprep.subr.bf16.mxu1 %v2519_v33  ;;  %v2592_v31 = vld [vmem:[%s3534_s3 + $0x48] ss:$28 sps:$4 sm:$0xff]   ;;  %v2600_v33 = vld [vmem:[%s3534_s3 + $0x14] ss:$28 sps:$4 sm:$0xff]  }
  0xfd   :  { %v2595_v32 = vld [vmem:[%s3534_s3 + $0x3c8] ss:$28 sps:$4 sm:$0xff]  }
  0xff   :  { %1748 = vmatpush2.bf16.msra.mxu0 %v2514_v34  ;;  %1791 = vmatpush2.bf16.msra.mxu1 %v2517_v35  ;;  %v2603_v34 = vld [vmem:[%s3534_s3 + $0x394] ss:$28 sps:$4 sm:$0xff]  }
 0x100   :  { %1749 = vmatprep.subr.bf16.mxu0 %v2522_v36  ;;  %1792 = vmatprep.subr.bf16.mxu1 %v2525_v37  ;;  %v2598_v35 = vld [vmem:[%s3534_s3 + $0x10] ss:$28 sps:$4 sm:$0xff]   ;;  %v2606_v37 = vld [vmem:[%s3534_s3 + $0x35c] ss:$28 sps:$4 sm:$0xff]  }
 0x101   :  { %v2601_v36 = vld [vmem:[%s3534_s3 + $0x390] ss:$28 sps:$4 sm:$0xff]  }
 0x103   :  { %1750 = vmatpush2.bf16.msra.mxu0 %v2520_v38  ;;  %1793 = vmatpush2.bf16.msra.mxu1 %v2523_v39  ;;  %v2609_v38 = vld [vmem:[%s3534_s3 + $0x6dc] ss:$28 sps:$4 sm:$0xff]  }
 0x104   :  { %1751 = vmatprep.subr.bf16.mxu0 %v2528_v40  ;;  %1794 = vmatprep.subr.bf16.mxu1 %v2531_v41  ;;  %v2604_v39 = vld [vmem:[%s3534_s3 + $0x358] ss:$28 sps:$4 sm:$0xff]   ;;  %v2612_v41 = vld [vmem:[%s3534_s3 + $0x324] ss:$28 sps:$4 sm:$0xff]  }
 0x105   :  { %v2607_v40 = vld [vmem:[%s3534_s3 + $0x6d8] ss:$28 sps:$4 sm:$0xff]  }
 0x107   :  { %1752 = vmatpush2.bf16.msra.mxu0 %v2526_v42  ;;  %1795 = vmatpush2.bf16.msra.mxu1 %v2529_v43  ;;  %v2615_v42 = vld [vmem:[%s3534_s3 + $0x6a4] ss:$28 sps:$4 sm:$0xff]  }
 0x108   :  { %1753 = vmatprep.subr.bf16.mxu0 %v2534_v44  ;;  %1796 = vmatprep.subr.bf16.mxu1 %v2537_v45  ;;  %v2610_v43 = vld [vmem:[%s3534_s3 + $0x320] ss:$28 sps:$4 sm:$0xff]   ;;  %v2618_v45 = vld [vmem:[%s3534_s3 + $0x2ec] ss:$28 sps:$4 sm:$0xff]  }
 0x109   :  { %v2613_v44 = vld [vmem:[%s3534_s3 + $0x6a0] ss:$28 sps:$4 sm:$0xff]  }
 0x10b   :  { %1754 = vmatpush2.bf16.msra.mxu0 %v2532_v46  ;;  %1797 = vmatpush2.bf16.msra.mxu1 %v2535_v47  ;;  %v2621_v46 = vld [vmem:[%s3534_s3 + $0x66c] ss:$28 sps:$4 sm:$0xff]  }
 0x10c   :  { %1755 = vmatprep.subr.bf16.mxu0 %v2540_v48  ;;  %1798 = vmatprep.subr.bf16.mxu1 %v2543_v49  ;;  %v2616_v47 = vld [vmem:[%s3534_s3 + $0x2e8] ss:$28 sps:$4 sm:$0xff]   ;;  %v2624_v49 = vld [vmem:[%s3534_s3 + $0x2b4] ss:$28 sps:$4 sm:$0xff]  }
 0x10d   :  { %v2619_v48 = vld [vmem:[%s3534_s3 + $0x668] ss:$28 sps:$4 sm:$0xff]  }
 0x10f   :  { %1756 = vmatpush2.bf16.msra.mxu0 %v2538_v50  ;;  %1799 = vmatpush2.bf16.msra.mxu1 %v2541_v51  ;;  %v2627_v50 = vld [vmem:[%s3534_s3 + $0x634] ss:$28 sps:$4 sm:$0xff]  }
 0x110   :  { %1757 = vmatprep.subr.bf16.mxu0 %v2546_v52  ;;  %1800 = vmatprep.subr.bf16.mxu1 %v2549_v55  ;;  %v2622_v51 = vld [vmem:[%s3534_s3 + $0x2b0] ss:$28 sps:$4 sm:$0xff]   ;;  %v2630_v55 = vld [vmem:[%s3534_s3 + $0x27c] ss:$28 sps:$4 sm:$0xff]  }
 0x111   :  { %v2625_v52 = vld [vmem:[%s3534_s3 + $0x630] ss:$28 sps:$4 sm:$0xff]  }
 0x113   :  { %1758 = vmatpush2.bf16.msra.mxu0 %v2544_v56  ;;  %1801 = vmatpush2.bf16.msra.mxu1 %v2547_v59  ;;  %v2633_v56 = vld [vmem:[%s3534_s3 + $0x5fc] ss:$28 sps:$4 sm:$0xff]  }
 0x114   :  { %1759 = vmatprep.subr.bf16.mxu0 %v2552_v60  ;;  %1802 = vmatprep.subr.bf16.mxu1 %v2555_v61  ;;  %v2628_v59 = vld [vmem:[%s3534_s3 + $0x278] ss:$28 sps:$4 sm:$0xff]   ;;  %v2636_v61 = vld [vmem:[%s3534_s3 + $0x244] ss:$28 sps:$4 sm:$0xff]  }
 0x115   :  { %v2631_v60 = vld [vmem:[%s3534_s3 + $0x5f8] ss:$28 sps:$4 sm:$0xff]  }
 0x117   :  { %1760 = vmatpush2.bf16.msra.mxu0 %v2550_v62  ;;  %1803 = vmatpush2.bf16.msra.mxu1 %v2553_v63  ;;  %v2639_v62 = vld [vmem:[%s3534_s3 + $0x5c4] ss:$28 sps:$4 sm:$0xff]  }
 0x118   :  { %1815 = vmatprep.subr.bf16.mxu0 %v2558_v0  ;;  %1858 = vmatprep.subr.bf16.mxu1 %v2561_v1  ;;  %v2634_v63 = vld [vmem:[%s3534_s3 + $0x240] ss:$28 sps:$4 sm:$0xff]   ;;  %v2642_v1 = vld [vmem:[%s3534_s3 + $0x20c] ss:$28 sps:$4 sm:$0xff]  }
 0x119   :  { %v2637_v0 = vld [vmem:[%s3534_s3 + $0x5c0] ss:$28 sps:$4 sm:$0xff]  }
 0x11a   :  { %1762 = vmatmul.mubr.bf16.vlgmr.msra.gmra.mxu0 %v3017_v57  ;;  %1805 = vmatmul.mubr.bf16.vlgmr.msra.gmra.mxu1 %v3019_v58 }
 0x11b   :  { %1816 = vmatpush1.bf16.msra.mxu0 %v2556_v2  ;;  %1847 = vmatprep.mubr.bf16.mxu0 %v3007_v53  ;;  %v2645_v2 = vld [vmem:[%s3534_s3 + $0x58c] ss:$28 sps:$4 sm:$0xff]  }
 0x11c   :  { %1859 = vmatpush1.bf16.msra.mxu1 %v2559_v3  ;;  %1890 = vmatprep.mubr.bf16.mxu1 %v3009_v54  ;;  %v2640_v3 = vld [vmem:[%s3534_s3 + $0x208] ss:$28 sps:$4 sm:$0xff]  }
 0x11d   :  { %1817 = vmatprep.subr.bf16.mxu0 %v2564_v4  ;;  %1860 = vmatprep.subr.bf16.mxu1 %v2567_v5  ;;  %v2643_v4 = vld [vmem:[%s3534_s3 + $0x588] ss:$28 sps:$4 sm:$0xff]   ;;  %v2648_v5 = vld [vmem:[%s3534_s3 + $0x1d4] ss:$28 sps:$4 sm:$0xff]  }
 0x11f   :  { %1818 = vmatpush1.bf16.msra.mxu0 %v2562_v6  ;;  %v2651_v6 = vld [vmem:[%s3534_s3 + $0x554] ss:$28 sps:$4 sm:$0xff]  }
 0x120   :  { %1861 = vmatpush1.bf16.msra.mxu1 %v2565_v7  ;;  %1819 = vmatprep.subr.bf16.mxu0 %v2570_v8  ;;  %v2646_v7 = vld [vmem:[%s3534_s3 + $0x1d0] ss:$28 sps:$4 sm:$0xff]  }
 0x121   :  { %1862 = vmatprep.subr.bf16.mxu1 %v2573_v9  ;;  %v2649_v8 = vld [vmem:[%s3534_s3 + $0x550] ss:$28 sps:$4 sm:$0xff]   ;;  %v2652_v9 = vld [vmem:[%s3534_s3 + $0x360] ss:$28 sps:$4 sm:$0xff]  }
 0x123   :  { %1820 = vmatpush1.bf16.msra.mxu0 %v2568_v10  ;;  %v2653_v10 = vld [vmem:[%s3534_s3 + $0x6e0] ss:$28 sps:$4 sm:$0xff]  }
 0x124   :  { %1863 = vmatpush1.bf16.msra.mxu1 %v2571_v11  ;;  %1821 = vmatprep.subr.bf16.mxu0 %v2576_v12  ;;  %v2654_v11 = vld [vmem:[%s3534_s3 + $0x1a0] ss:$28 sps:$4 sm:$0xff]  }
 0x125   :  { %1864 = vmatprep.subr.bf16.mxu1 %v2579_v13  ;;  %v2655_v12 = vld [vmem:[%s3534_s3 + $0x520] ss:$28 sps:$4 sm:$0xff]   ;;  %v2656_v13 = vld [vmem:[%s3534_s3 + $0x328] ss:$28 sps:$4 sm:$0xff]  }
 0x127   :  { %1822 = vmatpush1.bf16.msra.mxu0 %v2574_v14  ;;  %v2657_v14 = vld [vmem:[%s3534_s3 + $0x6a8] ss:$28 sps:$4 sm:$0xff]  }
 0x128   :  { %1865 = vmatpush1.bf16.msra.mxu1 %v2577_v15  ;;  %1823 = vmatprep.subr.bf16.mxu0 %v2582_v16  ;;  %v2658_v15 = vld [vmem:[%s3534_s3 + $0x168] ss:$28 sps:$4 sm:$0xff]  }
 0x129   :  { %1866 = vmatprep.subr.bf16.mxu1 %v2585_v17  ;;  %v2659_v16 = vld [vmem:[%s3534_s3 + $0x4e8] ss:$28 sps:$4 sm:$0xff]   ;;  %v2660_v17 = vld [vmem:[%s3534_s3 + $0x2f0] ss:$28 sps:$4 sm:$0xff]  }
 0x12b   :  { %1824 = vmatpush1.bf16.msra.mxu0 %v2580_v18  ;;  %v2661_v18 = vld [vmem:[%s3534_s3 + $0x670] ss:$28 sps:$4 sm:$0xff]  }
 0x12c   :  { %1867 = vmatpush1.bf16.msra.mxu1 %v2583_v24  ;;  %1825 = vmatprep.subr.bf16.mxu0 %v2588_v25  ;;  %v2663_v24 = vld [vmem:[%s3534_s3 + $0x4b0] ss:$28 sps:$4 sm:$0xff]   ;;  %v2665_v25 = vld [vmem:[%s3534_s3 + $0x638] ss:$28 sps:$4 sm:$0xff]  }
 0x12d   :  { %1868 = vmatprep.subr.bf16.mxu1 %v2591_v26  ;;  %v2666_v26 = vld [vmem:[%s3534_s3 + $0xf8] ss:$28 sps:$4 sm:$0xff]  }
 0x12f   :  { %1826 = vmatpush1.bf16.msra.mxu0 %v2586_v27  ;;  %v2667_v27 = vld [vmem:[%s3534_s3 + $0x478] ss:$28 sps:$4 sm:$0xff]  }
 0x130   :  { %1869 = vmatpush1.bf16.msra.mxu1 %v2589_v28  ;;  %1827 = vmatprep.subr.bf16.mxu0 %v2594_v29  ;;  %v2668_v28 = vld [vmem:[%s3534_s3 + $0x280] ss:$28 sps:$4 sm:$0xff]  }
 0x131   :  { %1870 = vmatprep.subr.bf16.mxu1 %v2597_v30  ;;  %v2669_v29 = vld [vmem:[%s3534_s3 + $0x600] ss:$28 sps:$4 sm:$0xff]  }
 0x132   :  { %v2670_v30 = vld [vmem:[%s3534_s3 + $0xc0] ss:$28 sps:$4 sm:$0xff]  }
 0x133   :  { %1828 = vmatpush1.bf16.msra.mxu0 %v2592_v31  ;;  %v2671_v31 = vld [vmem:[%s3534_s3 + $0x440] ss:$28 sps:$4 sm:$0xff]  }
 0x134   :  { %1871 = vmatpush1.bf16.msra.mxu1 %v2595_v32  ;;  %1829 = vmatprep.subr.bf16.mxu0 %v2600_v33  ;;  %v2672_v32 = vld [vmem:[%s3534_s3 + $0x248] ss:$28 sps:$4 sm:$0xff]  }
 0x135   :  { %1872 = vmatprep.subr.bf16.mxu1 %v2603_v34  ;;  %v2673_v33 = vld [vmem:[%s3534_s3 + $0x5c8] ss:$28 sps:$4 sm:$0xff]  }
 0x136   :  { %v2674_v34 = vld [vmem:[%s3534_s3 + $0x88] ss:$28 sps:$4 sm:$0xff]  }
 0x137   :  { %1830 = vmatpush1.bf16.msra.mxu0 %v2598_v35  ;;  %v2675_v35 = vld [vmem:[%s3534_s3 + $0x408] ss:$28 sps:$4 sm:$0xff]  }
 0x138   :  { %1873 = vmatpush1.bf16.msra.mxu1 %v2601_v36  ;;  %1831 = vmatprep.subr.bf16.mxu0 %v2606_v37  ;;  %v2676_v36 = vld [vmem:[%s3534_s3 + $0x210] ss:$28 sps:$4 sm:$0xff]  }
 0x139   :  { %1874 = vmatprep.subr.bf16.mxu1 %v2609_v38  ;;  %v2677_v37 = vld [vmem:[%s3534_s3 + $0x590] ss:$28 sps:$4 sm:$0xff]  }
 0x13a   :  { %v2678_v38 = vld [vmem:[%s3534_s3 + $0x50] ss:$28 sps:$4 sm:$0xff]  }
 0x13b   :  { %1832 = vmatpush2.bf16.msra.mxu0 %v2604_v39  ;;  %v2679_v39 = vld [vmem:[%s3534_s3 + $0x3d0] ss:$28 sps:$4 sm:$0xff]  }
 0x13c   :  { %1875 = vmatpush2.bf16.msra.mxu1 %v2607_v40  ;;  %1833 = vmatprep.subr.bf16.mxu0 %v2612_v41  ;;  %v2680_v40 = vld [vmem:[%s3534_s3 + $0x1d8] ss:$28 sps:$4 sm:$0xff]  }
 0x13d   :  { %1876 = vmatprep.subr.bf16.mxu1 %v2615_v42  ;;  %v2681_v41 = vld [vmem:[%s3534_s3 + $0x558] ss:$28 sps:$4 sm:$0xff]  }
 0x13e   :  { %v2682_v42 = vld [vmem:[%s3534_s3 + $0x18] ss:$28 sps:$4 sm:$0xff]  }
 0x13f   :  { %1834 = vmatpush2.bf16.msra.mxu0 %v2610_v43  ;;  %v2683_v43 = vld [vmem:[%s3534_s3 + $0x398] ss:$28 sps:$4 sm:$0xff]  }
 0x140   :  { %1877 = vmatpush2.bf16.msra.mxu1 %v2613_v44  ;;  %1835 = vmatprep.subr.bf16.mxu0 %v2618_v45  ;;  %v3508_v44 = vld [vmem:[%s3535_s4] sm:$0x7f] }
 0x141   :  { %1878 = vmatprep.subr.bf16.mxu1 %v2621_v46  ;;  %v459_v45 = vrot.slane %v3508_v44, %v35_v22  ;;  %v463_v46 = vrot.slane %v3508_v44, %v39_v20 }
 0x143   :  { %1836 = vmatpush2.bf16.msra.mxu0 %v2616_v47 }
 0x144   :  { %1879 = vmatpush2.bf16.msra.mxu1 %v2619_v48  ;;  %1837 = vmatprep.subr.bf16.mxu0 %v2624_v49 }
 0x145   :  { %1880 = vmatprep.subr.bf16.mxu1 %v2627_v50 }
 0x147   :  { %1838 = vmatpush2.bf16.msra.mxu0 %v2622_v51 }
 0x148   :  { %1881 = vmatpush2.bf16.msra.mxu1 %v2625_v52  ;;  %1839 = vmatprep.subr.bf16.mxu0 %v2630_v55 }
 0x149   :  { %1882 = vmatprep.subr.bf16.mxu1 %v2633_v56 }
 0x14b   :  { %1840 = vmatpush2.bf16.msra.mxu0 %v2628_v59 }
 0x14c   :  { %1883 = vmatpush2.bf16.msra.mxu1 %v2631_v60  ;;  %1841 = vmatprep.subr.bf16.mxu0 %v2636_v61 }
 0x14d   :  { %1884 = vmatprep.subr.bf16.mxu1 %v2639_v62 }
 0x14f   :  { %1842 = vmatpush2.bf16.msra.mxu0 %v2634_v63 }
 0x150   :  { %1885 = vmatpush2.bf16.msra.mxu1 %v2637_v0  ;;  %1843 = vmatprep.subr.bf16.mxu0 %v2642_v1 }
 0x151   :  { %1886 = vmatprep.subr.bf16.mxu1 %v2645_v2 }
 0x153   :  { %1844 = vmatpush2.bf16.msra.mxu0 %v2640_v3 }
 0x154   :  { %1887 = vmatpush2.bf16.msra.mxu1 %v2643_v4  ;;  %1845 = vmatprep.subr.bf16.mxu0 %v2648_v5 }
 0x155   :  { %1888 = vmatprep.subr.bf16.mxu1 %v2651_v6 }
 0x157   :  { %1846 = vmatpush2.bf16.msra.mxu0 %v2646_v7 }
 0x158   :  { %1889 = vmatpush2.bf16.msra.mxu1 %v2649_v8  ;;  %2306 = vmatprep.subr.bf16.mxu0 %v2652_v9 }
 0x159   :  { %2328 = vmatprep.subr.bf16.mxu1 %v2653_v10 }
 0x15a   :  { %1848 = vmatmul.mubr.bf16.vlgmr.msra.gmra.mxu0 %v3017_v57 }
 0x15b   :  { %1891 = vmatmul.mubr.bf16.vlgmr.msra.gmra.mxu1 %v3019_v58  ;;  %2307 = vmatpush3.bf16.msra.mxu0 %v2654_v11 }
 0x15c   :  { %1933 = vmatprep.mubr.bf16.mxu0 %v3007_v53  ;;  %2329 = vmatpush3.bf16.msra.mxu1 %v2655_v12  ;;  %v2662_v53 = vld [vmem:[%s3534_s3 + $0x130] ss:$28 sps:$4 sm:$0xff]  }
 0x15d   :  { %1974 = vmatprep.mubr.bf16.mxu1 %v3009_v54  ;;  %2308 = vmatprep.subr.bf16.mxu0 %v2656_v13  ;;  %v2664_v54 = vld [vmem:[%s3534_s3 + $0x2b8] ss:$28 sps:$4 sm:$0xff]   ;;  %s2735_s3 = smov [#allocation2]  }
 0x15e   :  { %2330 = vmatprep.subr.bf16.mxu1 %v2657_v14  ;;  %s2059_s4 = sshll.u32 %s2735_s3, 4  ;;  %s2060_s4 = int_to_ptr.vmem [resolvable:$true] %s2059_s4 }
 0x15f   :  { %2309 = vmatpush3.bf16.msra.mxu0 %v2658_v15  ;;  %v467_v15 = vrot.slane %v3508_v44, %v43_v23  ;;  %s2712_s15 = scalar_lea.vmem %s2060_s4, 1792  ;;  %p2717_p1 = scmp.lt.s32.totalorder %s2060_s4, %s2060_s4 }
 0x160   :  { %2331 = vmatpush3.bf16.msra.mxu1 %v2659_v16  ;;  %2310 = vmatprep.subr.bf16.mxu0 %v2660_v17  ;;  %v471_v16 = vrot.slane %v3508_v44, %v47_v21  ;;  %p2713_p0 = scmp.ne.s32.totalorder %s2060_s4, %s2712_s15  ;;  %p2718_p2 = scmp.lt.s32.totalorder %s2712_s15, %s2712_s15 }
 0x161   :  { %2332 = vmatprep.subr.bf16.mxu1 %v2661_v18 }
 0x162   :  { %p2719_p3 = por %p2718_p2, %p2717_p1 }
 0x163   :  { %2311 = vmatpush3.bf16.msra.mxu0 %v2662_v53 }
 0x164   :  { %2333 = vmatpush3.bf16.msra.mxu1 %v2663_v24  ;;  %2312 = vmatprep.subr.bf16.mxu0 %v2664_v54  ;;  %p2720_p4 = pnand %p2719_p3, %p2713_p0 }
 0x165   :  { %2334 = vmatprep.subr.bf16.mxu1 %v2665_v25 }
 0x167   :  { %2313 = vmatpush3.bf16.msra.mxu0 %v2666_v26 }
 0x168   :  { %2335 = vmatpush3.bf16.msra.mxu1 %v2667_v27  ;;  %2314 = vmatprep.subr.bf16.mxu0 %v2668_v28 }
 0x169   :  { %2336 = vmatprep.subr.bf16.mxu1 %v2669_v29 }
 0x16b   :  { %2315 = vmatpush3.bf16.msra.mxu0 %v2670_v30 }
 0x16c   :  { %2337 = vmatpush3.bf16.msra.mxu1 %v2671_v31  ;;  %2316 = vmatprep.subr.bf16.mxu0 %v2672_v32 }
 0x16d   :  { %2338 = vmatprep.subr.bf16.mxu1 %v2673_v33 }
 0x16f   :  { %2317 = vmatpush3.bf16.msra.mxu0 %v2674_v34 }
 0x170   :  { %2339 = vmatpush3.bf16.msra.mxu1 %v2675_v35  ;;  %2318 = vmatprep.subr.bf16.mxu0 %v2676_v36 }
 0x171   :  { %2340 = vmatprep.subr.bf16.mxu1 %v2677_v37 }
 0x173   :  { %2319 = vmatpush3.bf16.msra.mxu0 %v2678_v38 }
 0x174   :  { %2341 = vmatpush3.bf16.msra.mxu1 %v2679_v39  ;;  %2320 = vmatprep.subr.bf16.mxu0 %v2680_v40 }
 0x175   :  { %2342 = vmatprep.subr.bf16.mxu1 %v2681_v41 }
 0x177   :  { %2321 = vmatpush3.bf16.msra.mxu0 %v2682_v42 }
 0x178   :  { %2343 = vmatpush3.bf16.msra.mxu1 %v2683_v43 }
 0x17a   :  { %1934 = vmatmul.mubr.bf16.vlgmr.msra.gmra.mxu0 %v3017_v57 }
 0x17b   :  { %1975 = vmatmul.mubr.bf16.vlgmr.msra.gmra.mxu1 %v3019_v58 }
 0x19a   :  { %v1677_v47 = vpop.f32.mrf.mxu0  ;;  %v1720_v48 = vpop.f32.mrf.mxu1 }
 0x19b   :  { %v1678_v49 = vadd.f32 %v1677_v47, %v459_v45 }
 0x19c   :  { %v1679_v50 = vpop.f32.mrf.mxu0  ;;  %v1722_v57 = vpop.f32.mrf.mxu1 }
 0x19d   :  { %v1721_v51 = vadd.f32 %v1720_v48, %v1678_v49  ;;  %v1680_v58 = vadd.f32 %v1679_v50, %v463_v46 }
 0x19e   :  { %v1681_v52 = vpop.f32.mrf.mxu0  ;;  %v1724_v55 = vpop.f32.mrf.mxu1 }
 0x19f   :  { %v1983_v56 = vmul.f32 0.5, %v1721_v51  ;;  %v1723_v59 = vadd.f32 %v1722_v57, %v1680_v58  ;;  %v1682_v60 = vadd.f32 %v1681_v52, %v459_v45  ;;  %v474_v57 = vsub.s32 4, %v2990_v19 }
 0x1a0   :  { %v1683_v61 = vpop.f32.mrf.mxu0  ;;  %v1726_v0 = vpop.f32.mrf.mxu1  ;;  %v478_v51 = vsub.s32 5, %v2990_v19 }
 0x1a1   :  { %2684 = vtanh.f32 %v1983_v56  ;;  %v1984_v62 = vmul.f32 0.5, %v1723_v59  ;;  %v1725_v22 = vadd.f32 %v1724_v55, %v1682_v60  ;;  %v1684_v63 = vadd.f32 %v1683_v61, %v463_v46 }
 0x1a2   :  { %v475_v58 = vrot.slane %v3508_v44, %v474_v57  ;;  %v479_v52 = vrot.slane %v3508_v44, %v478_v51 }
 0x1a3   :  { %2686 = vtanh.f32 %v1984_v62  ;;  %v1990_v20 = vmul.f32 0.5, %v1725_v22  ;;  %v1727_v1 = vadd.f32 %v1726_v0, %v1684_v63 }
 0x1a5   :  { %2688 = vtanh.f32 %v1990_v20  ;;  %v1991_v2 = vmul.f32 0.5, %v1727_v1 }
 0x1a7   :  { %2690 = vtanh.f32 %v1991_v2 }
 0x1ae   :  { %v2685_v3 = vpop.eup %2684 }
 0x1af   :  { %v2011_v4 = vadd.f32 1.0, %v2685_v3 }
 0x1b0   :  { %v2687_v5 = vpop.eup %2686 }
 0x1b1   :  { %v2025_v6 = vmul.f32 0.5, %v2011_v4  ;;  %v2012_v7 = vadd.f32 1.0, %v2687_v5 }
 0x1b2   :  { %v2689_v8 = vpop.eup %2688 }
 0x1b3   :  { %2039 = vst [vmem:[#allocation2] sm:$0xff] %v2025_v6  ;;  %v2026_v9 = vmul.f32 0.5, %v2012_v7  ;;  %v2018_v10 = vadd.f32 1.0, %v2689_v8 }
 0x1b4   :  { %v2691_v11 = vpop.eup %2690 }
 0x1b5   :  { %2040 = vst [vmem:[#allocation2 + $0x8] sm:$0xff] %v2026_v9  ;;  %v2032_v12 = vmul.f32 0.5, %v2018_v10  ;;  %v2019_v13 = vadd.f32 1.0, %v2691_v11 }
 0x1b7   :  { %2047 = vst [vmem:[#allocation2 + $0x38] sm:$0xff] %v2032_v12  ;;  %v2033_v14 = vmul.f32 0.5, %v2019_v13 }
 0x1b9   :  { %2048 = vst [vmem:[#allocation2 + $0x40] sm:$0xff] %v2033_v14 }
 0x1da   :  { %v1763_v17 = vpop.f32.mrf.mxu0  ;;  %v1806_v18 = vpop.f32.mrf.mxu1 }
 0x1db   :  { %v1764_v53 = vadd.f32 %v1763_v17, %v467_v15 }
 0x1dc   :  { %v1765_v24 = vpop.f32.mrf.mxu0  ;;  %v1808_v54 = vpop.f32.mrf.mxu1 }
 0x1dd   :  { %v1807_v25 = vadd.f32 %v1806_v18, %v1764_v53  ;;  %v1766_v26 = vadd.f32 %v1765_v24, %v471_v16 }
 0x1de   :  { %v1767_v27 = vpop.f32.mrf.mxu0  ;;  %v1810_v28 = vpop.f32.mrf.mxu1 }
 0x1df   :  { %v1985_v29 = vmul.f32 0.5, %v1807_v25  ;;  %v1809_v30 = vadd.f32 %v1808_v54, %v1766_v26  ;;  %v1768_v31 = vadd.f32 %v1767_v27, %v467_v15  ;;  %v482_v26 = vsub.s32 6, %v2990_v19 }
 0x1e0   :  { %v1769_v32 = vpop.f32.mrf.mxu0  ;;  %v1812_v35 = vpop.f32.mrf.mxu1 }
 0x1e1   :  { %2692 = vtanh.f32 %v1985_v29  ;;  %v1986_v33 = vmul.f32 0.5, %v1809_v30  ;;  %v1811_v23 = vadd.f32 %v1810_v28, %v1768_v31  ;;  %v1770_v34 = vadd.f32 %v1769_v32, %v471_v16 }
 0x1e2   :  { %v483_v29 = vrot.slane %v3508_v44, %v482_v26 }
 0x1e3   :  { %2694 = vtanh.f32 %v1986_v33  ;;  %v1992_v21 = vmul.f32 0.5, %v1811_v23  ;;  %v1813_v36 = vadd.f32 %v1812_v35, %v1770_v34 }
 0x1e5   :  { %2696 = vtanh.f32 %v1992_v21  ;;  %v1993_v37 = vmul.f32 0.5, %v1813_v36 }
 0x1e7   :  { %2698 = vtanh.f32 %v1993_v37 }
 0x1ee   :  { %v2693_v38 = vpop.eup %2692 }
 0x1ef   :  { %v2013_v39 = vadd.f32 1.0, %v2693_v38 }
 0x1f0   :  { %v2695_v40 = vpop.eup %2694 }
 0x1f1   :  { %v2027_v41 = vmul.f32 0.5, %v2013_v39  ;;  %v2014_v42 = vadd.f32 1.0, %v2695_v40 }
 0x1f2   :  { %v2697_v43 = vpop.eup %2696 }
 0x1f3   :  { %2041 = vst [vmem:[#allocation2 + $0x10] sm:$0xff] %v2027_v41  ;;  %v2028_v45 = vmul.f32 0.5, %v2014_v42  ;;  %v2020_v46 = vadd.f32 1.0, %v2697_v43 }
 0x1f4   :  { %v2699_v47 = vpop.eup %2698 }
 0x1f5   :  { %2042 = vst [vmem:[#allocation2 + $0x18] sm:$0xff] %v2028_v45  ;;  %v2034_v48 = vmul.f32 0.5, %v2020_v46  ;;  %v2021_v49 = vadd.f32 1.0, %v2699_v47 }
 0x1f7   :  { %2049 = vst [vmem:[#allocation2 + $0x48] sm:$0xff] %v2034_v48  ;;  %v2035_v50 = vmul.f32 0.5, %v2021_v49 }
 0x1f9   :  { %2050 = vst [vmem:[#allocation2 + $0x50] sm:$0xff] %v2035_v50 }
 0x21a   :  { %v1849_v55 = vpop.f32.mrf.mxu0 }
 0x21b   :  { %v1850_v56 = vadd.f32 %v1849_v55, %v475_v58  ;;  %v1892_v59 = vpop.f32.mrf.mxu1 }
 0x21c   :  { %v1851_v60 = vpop.f32.mrf.mxu0 }
 0x21d   :  { %v1893_v61 = vadd.f32 %v1892_v59, %v1850_v56  ;;  %v1852_v62 = vadd.f32 %v1851_v60, %v479_v52  ;;  %v1894_v22 = vpop.f32.mrf.mxu1 }
 0x21e   :  { %v1853_v63 = vpop.f32.mrf.mxu0 }
 0x21f   :  { %v1987_v0 = vmul.f32 0.5, %v1893_v61  ;;  %v1895_v20 = vadd.f32 %v1894_v22, %v1852_v62  ;;  %v1854_v1 = vadd.f32 %v1853_v63, %v475_v58  ;;  %v1896_v2 = vpop.f32.mrf.mxu1 }
 0x220   :  { %v1855_v3 = vpop.f32.mrf.mxu0 }
 0x221   :  { %2700 = vtanh.f32 %v1987_v0  ;;  %v1988_v4 = vmul.f32 0.5, %v1895_v20  ;;  %v1897_v5 = vadd.f32 %v1896_v2, %v1854_v1  ;;  %v1856_v6 = vadd.f32 %v1855_v3, %v479_v52  ;;  %v1898_v7 = vpop.f32.mrf.mxu1 }
 0x223   :  { %2702 = vtanh.f32 %v1988_v4  ;;  %v1994_v8 = vmul.f32 0.5, %v1897_v5  ;;  %v1899_v9 = vadd.f32 %v1898_v7, %v1856_v6 }
 0x225   :  { %2704 = vtanh.f32 %v1994_v8  ;;  %v1995_v10 = vmul.f32 0.5, %v1899_v9 }
 0x227   :  { %2706 = vtanh.f32 %v1995_v10 }
 0x22e   :  { %v2701_v11 = vpop.eup %2700 }
 0x22f   :  { %v2015_v12 = vadd.f32 1.0, %v2701_v11 }
 0x230   :  { %v2703_v13 = vpop.eup %2702 }
 0x231   :  { %v2029_v14 = vmul.f32 0.5, %v2015_v12  ;;  %v2016_v15 = vadd.f32 1.0, %v2703_v13 }
 0x232   :  { %v2705_v16 = vpop.eup %2704 }
 0x233   :  { %2043 = vst [vmem:[#allocation2 + $0x20] sm:$0xff] %v2029_v14  ;;  %v2030_v17 = vmul.f32 0.5, %v2016_v15  ;;  %v2022_v18 = vadd.f32 1.0, %v2705_v16 }
 0x234   :  { %v2707_v53 = vpop.eup %2706 }
 0x235   :  { %2044 = vst [vmem:[#allocation2 + $0x28] sm:$0xff] %v2030_v17  ;;  %v2036_v24 = vmul.f32 0.5, %v2022_v18  ;;  %v2023_v54 = vadd.f32 1.0, %v2707_v53 }
 0x237   :  { %2051 = vst [vmem:[#allocation2 + $0x58] sm:$0xff] %v2036_v24  ;;  %v2037_v25 = vmul.f32 0.5, %v2023_v54 }
 0x239   :  { %2052 = vst [vmem:[#allocation2 + $0x60] sm:$0xff] %v2037_v25 }
 0x23a   :  { %v2322_v27 = vpop.f32.mrf.mxu0 }
 0x23b   :  { %v2344_v28 = vpop.f32.mrf.mxu1 }
 0x23c   :  { %v2323_v30 = vpop.f32.mrf.mxu0 }
 0x23d   :  { %v2324_v31 = vadd.f32 %v2323_v30, %v2322_v27  ;;  %v2345_v32 = vpop.f32.mrf.mxu1 }
 0x23e   :  { %v2325_v33 = vpop.f32.mrf.mxu0  ;;  %v2346_v34 = vadd.f32 %v2345_v32, %v2344_v28 }
 0x23f   :  { %v1936_v23 = vadd.f32 %v2324_v31, %v483_v29  ;;  %v2347_v35 = vpop.f32.mrf.mxu1 }
 0x240   :  { %v2326_v21 = vpop.f32.mrf.mxu0 }
 0x241   :  { %v1977_v36 = vadd.f32 %v2346_v34, %v1936_v23  ;;  %v2327_v37 = vadd.f32 %v2326_v21, %v2325_v33  ;;  %v2348_v38 = vpop.f32.mrf.mxu1 }
 0x242   :  { %v2349_v41 = vadd.f32 %v2348_v38, %v2347_v35 }
 0x243   :  { %v1989_v39 = vmul.f32 0.5, %v1977_v36  ;;  %v1939_v40 = vadd.f32 %v2327_v37, %v483_v29 }
 0x245   :  { %2708 = vtanh.f32 %v1989_v39  ;;  %v1980_v19 = vadd.f32 %v2349_v41, %v1939_v40 }
 0x247   :  { %v1996_v42 = vmul.f32 0.5, %v1980_v19 }
 0x249   :  { %2710 = vtanh.f32 %v1996_v42 }
 0x252   :  { %v2709_v43 = vpop.eup %2708 }
 0x253   :  { %v2017_v44 = vadd.f32 1.0, %v2709_v43 }
 0x255   :  { %v2031_v45 = vmul.f32 0.5, %v2017_v44 }
 0x256   :  { %v2711_v46 = vpop.eup %2710 }
 0x257   :  { %2046 = vst.msk [vmem:[#allocation2 + $0x30] sm:$0xff] %vm2045_vm2, %v2031_v45  ;;  %v2024_v47 = vadd.f32 1.0, %v2711_v46 }
 0x259   :  { %v2038_v48 = vmul.f32 0.5, %v2024_v47 }
 0x25b   :  { %2053 = vst.msk [vmem:[#allocation2 + $0x68] sm:$0xff] %vm2045_vm2, %v2038_v48 }
 0x25c   :  { %2723 = shalt.err (!%p2720_p4)
}
 0x25d   :  { %s2736_s16 = smov 896   ;;  %s2737_s17 = smov 56  }
 0x25e   :  { %2065 = dma.vmem_to_hbm [thread:$0]  %s2060_s4, 1792, %s3536_s5, [#allocation3], %s2736_s16, %s2736_s16, %s2737_s17  }
 0x25f   :  { %2732 = dma.done.wait [#allocation3], 1792  }
 0x260   :  { %2733 = vsyncadd [#allocation3], 4294965504 }
 0x261   :  { %2069 = vsyncpa [#allocation3], 1 }

</bundles_post_ra>
